<compile_context>
chip_gen: v7x
topology: tpu7x:2x2x1
jax: 0.10.0
libtpu: 0.0.40
codegen_flags: <defaults>
</compile_context>

<pallas_src>
import functools

import jax
import jax.numpy as jnp
from jax.experimental import pallas as pl
from jax.experimental.pallas import tpu as pltpu


# ----------------------------- Pallas kernel --------------------------------
def up_fused_kernel(x1_ref, x2_ref, mt_ref, mask1_ref, mask2_ref,
                    w1_ref, b1_ref, w2_ref, b2_ref, o_ref, *, W):
    """One grid step = NB lane-stacked batch elements.

    x1_ref:    (1, C1, NB*H1*W1)   low-res decoder feature (f32)
    x2_ref:    (1, C2, L)          skip connection, L = NB*H*W (f32)
    mt_ref:    (NB*H1*W1, L)       block-diag bilinear-upsample(+pad) matrix (bf16)
    mask1_ref: (9*(C1+C2), L)      stacked per-tap border masks for conv1 (f32)
    mask2_ref: (9*Cout, L)         stacked per-tap border masks for conv2 (f32)
    w1_ref:    (Cout, 9*(C1+C2))   conv1 weights, stacked-K, BN folded (bf16)
    b1_ref:    (Cout, 1)           conv1 bias + BN shift (f32)
    w2_ref:    (Cout, 9*Cout)      conv2 weights, stacked-K, BN folded (bf16)
    b2_ref:    (Cout, 1)           conv2 bias + BN shift (f32)
    o_ref:     (1, Cout, L)        output, lane-dense spatial axis (f32)
    """
    L = x2_ref.shape[-1]

    def stack9(x):
        # 9 rolled copies stacked tap-major along sublanes: (9*Cin, L).
        # Lane-roll wrap across image/batch boundaries is harmless: those
        # positions are exactly the ones the border masks zero out.
        parts = []
        for dy in (-1, 0, 1):
            for dx in (-1, 0, 1):
                delta = dy * W + dx
                if delta == 0:
                    parts.append(x)
                else:
                    parts.append(pltpu.roll(x, shift=(-delta) % L, axis=1))
        return jnp.concatenate(parts, axis=0)

    # 1) bilinear 2x upsample (align_corners=True) + F.pad == ONE matmul.
    x1u = jnp.dot(x1_ref[0].astype(jnp.bfloat16), mt_ref[...],
                  preferred_element_type=jnp.float32)            # (C1, L)

    # 2) concat([x2, up(x1)], channel): a plain sublane concat.
    cat = jnp.concatenate([x2_ref[0], x1u], axis=0)              # (C1+C2, L)

    # 3) conv1 + BN + ReLU: one stacked-K MXU matmul, one mask multiply.
    s1 = stack9(cat) * mask1_ref[...]                            # (9*Cin1, L)
    y1 = jnp.maximum(
        jnp.dot(w1_ref[...], s1.astype(jnp.bfloat16),
                preferred_element_type=jnp.float32) + b1_ref[...], 0.0)

    # 4) conv2 + BN + ReLU.
    s2 = stack9(y1) * mask2_ref[...]                             # (9*Cout, L)
    y2 = jnp.maximum(
        jnp.dot(w2_ref[...], s2.astype(jnp.bfloat16),
                preferred_element_type=jnp.float32) + b2_ref[...], 0.0)

    o_ref[0] = y2


# --------------------------- host-side constants -----------------------------
def upsample_matrix_1d(n_in, n_out):
    """(n_out, n_in) 1-D linear-interpolation matrix, align_corners=True."""
    if n_in == 1:
        return jnp.ones((n_out, 1), jnp.float32)
    src = jnp.linspace(0.0, n_in - 1.0, n_out)
    i0 = jnp.clip(jnp.floor(src), 0, n_in - 2).astype(jnp.int32)
    frac = src - i0.astype(jnp.float32)
    cols = jnp.arange(n_in)[None, :]
    A = ((1.0 - frac)[:, None] * (cols == i0[:, None])
         + frac[:, None] * (cols == (i0 + 1)[:, None]))
    return A.astype(jnp.float32)


def border_masks(H, W):
    """(9, H*W) validity masks (1.0 valid / 0.0 pad) for the 9 conv taps."""
    hh, ww = jnp.meshgrid(jnp.arange(H), jnp.arange(W), indexing="ij")
    hh = hh.reshape(H * W)
    ww = ww.reshape(H * W)
    rows = []
    for dy in (-1, 0, 1):
        for dx in (-1, 0, 1):
            valid = ((hh + dy >= 0) & (hh + dy < H) &
                     (ww + dx >= 0) & (ww + dx < W))
            rows.append(valid)
    return jnp.stack(rows, axis=0).astype(jnp.float32)


def make_folded_conv_bn(key, cin, cout, eps=1e-5):
    """Synthetic conv3x3 + BatchNorm (eval) params, folded and stacked-K.

    Returns:
      w_stacked: (cout, 9*cin) -- column index = tap*cin + channel,
                 tap = (dy+1)*3 + (dx+1); BN scale folded in.
      bias:      (cout, 1)     -- conv bias + BN shift, folded.
    """
    kw, kb, kg, kbeta, km, kv = jax.random.split(key, 6)
    w = 0.1 * jax.random.normal(kw, (3, 3, cin, cout), jnp.float32)   # HWIO
    b = 0.1 * jax.random.normal(kb, (cout,), jnp.float32)
    gamma = 1.0 + 0.1 * jax.random.normal(kg, (cout,), jnp.float32)
    beta = 0.1 * jax.random.normal(kbeta, (cout,), jnp.float32)
    mean = 0.1 * jax.random.normal(km, (cout,), jnp.float32)
    var = jax.random.uniform(kv, (cout,), jnp.float32, 0.5, 1.5)
    s = gamma / jnp.sqrt(var + eps)
    w_taps = jnp.transpose(w, (0, 1, 3, 2)).reshape(9, cout, cin)     # tap-major
    w_taps = w_taps * s[None, :, None]                                # fold BN scale
    bias = (s * (b - mean) + beta)[:, None]                           # (cout, 1)
    w_stacked = jnp.transpose(w_taps, (1, 0, 2)).reshape(cout, 9 * cin)
    return w_stacked, bias


def make_up_params(key, in_ch, out_ch):
    """double_conv(in_ch, out_ch) params (conv1 acts on concat([x2, x1]))."""
    k1, k2 = jax.random.split(key)
    return make_folded_conv_bn(k1, in_ch, out_ch), make_folded_conv_bn(k2, out_ch, out_ch)


# ------------------------------ batch layout ---------------------------------
def _pick_batch_lane_group(n):
    """NB batch elements lane-stacked per grid step.

    v7x has 2 TensorCores -> keep grid=(N,) "parallel" (NB=1); single-core
    v5e/v6e -> stack the whole batch into one grid step (NB=N).
    """
    try:
        kind = jax.devices()[0].device_kind.lower()
    except Exception:
        kind = ""
    return 1 if "7" in kind else n


def _lane_stack(x, nb):
    # (N, C, HW) -> (N//nb, C, nb*HW): nb consecutive batch elems along lanes.
    n, c, hw = x.shape
    return (x.reshape(n // nb, nb, c, hw)
             .transpose(0, 2, 1, 3)
             .reshape(n // nb, c, nb * hw))


def _lane_unstack(y, nb, h, w):
    nblk, c, L = y.shape
    hw = L // nb
    return (y.reshape(nblk, c, nb, hw)
             .transpose(0, 2, 1, 3)
             .reshape(nblk * nb, c, h, w))


# ------------------------------- forward -------------------------------------
def make_up_forward(params, *, x1_shape, x2_shape, nb=None):
    """Builds a jitted forward; all shape-only constants are precomputed here."""
    (w1s, b1), (w2s, b2) = params
    N, C1, H1, W1 = x1_shape
    N2, C2, H, W = x2_shape
    assert N2 == N
    Cout = w2s.shape[0]
    Cin1 = w1s.shape[1] // 9
    assert Cin1 == C1 + C2
    HW, H1W1 = H * W, H1 * W1

    if nb is None:
        nb = _pick_batch_lane_group(N)
    assert N % nb == 0
    nblk = N // nb
    L = nb * HW

    # ---- constants (built ONCE, outside the jitted forward) ----
    Ah = upsample_matrix_1d(H1, 2 * H1)
    Aw = upsample_matrix_1d(W1, 2 * W1)
    diffY, diffX = H - 2 * H1, W - 2 * W1
    Ah = jnp.pad(Ah, ((diffY // 2, diffY - diffY // 2), (0, 0)))
    Aw = jnp.pad(Aw, ((diffX // 2, diffX - diffX // 2), (0, 0)))
    Mt = jnp.kron(Ah, Aw).T                                        # (H1W1, HW)
    Mt = jnp.kron(jnp.eye(nb, dtype=jnp.float32), Mt)              # block-diag
    Mt = Mt.astype(jnp.bfloat16)                                   # (nb*H1W1, L)

    m9 = border_masks(H, W)                                        # (9, HW)
    mask1 = jnp.tile(jnp.repeat(m9, Cin1, axis=0), (1, nb))        # (9*Cin1, L)
    mask2 = jnp.tile(jnp.repeat(m9, Cout, axis=0), (1, nb))        # (9*Cout, L)

    w1_bf = w1s.astype(jnp.bfloat16)
    w2_bf = w2s.astype(jnp.bfloat16)

    kernel = functools.partial(up_fused_kernel, W=W)
    call = pl.pallas_call(
        kernel,
        out_shape=jax.ShapeDtypeStruct((nblk, Cout, L), jnp.float32),
        grid=(nblk,),
        in_specs=[
            pl.BlockSpec((1, C1, nb * H1W1), lambda n: (n, 0, 0)),   # x1
            pl.BlockSpec((1, C2, L), lambda n: (n, 0, 0)),           # x2
            pl.BlockSpec((nb * H1W1, L), lambda n: (0, 0)),          # upsample mat
            pl.BlockSpec((9 * Cin1, L), lambda n: (0, 0)),           # mask conv1
            pl.BlockSpec((9 * Cout, L), lambda n: (0, 0)),           # mask conv2
            pl.BlockSpec((Cout, 9 * Cin1), lambda n: (0, 0)),        # w1 stacked
            pl.BlockSpec((Cout, 1), lambda n: (0, 0)),               # b1
            pl.BlockSpec((Cout, 9 * Cout), lambda n: (0, 0)),        # w2 stacked
            pl.BlockSpec((Cout, 1), lambda n: (0, 0)),               # b2
        ],
        out_specs=pl.BlockSpec((1, Cout, L), lambda n: (n, 0, 0)),
        compiler_params=pltpu.CompilerParams(
            dimension_semantics=("parallel",)),
    )

    @jax.jit
    def forward(x1_nchw, x2_nchw):
        x1f = _lane_stack(x1_nchw.reshape(N, C1, H1W1), nb)
        x2f = _lane_stack(x2_nchw.reshape(N, C2, HW), nb)
        y = call(x1f, x2f, Mt, mask1, mask2, w1_bf, b1, w2_bf, b2)
        return _lane_unstack(y, nb, H, W)

    return forward


# --------------------------------- main ---------------------------------------
if __name__ == "__main__":
    key = jax.random.PRNGKey(0)
    k_x1, k_x2, k_p = jax.random.split(key, 3)

    in_ch, out_ch = 8, 8
    N = 2
    # UNet-style: x1 = low-res decoder feature, x2 = skip connection (NCHW).
    x1 = jax.random.normal(k_x1, (N, in_ch // 2, 8, 8), jnp.float32)
    x2 = jax.random.normal(k_x2, (N, in_ch // 2, 16, 16), jnp.float32)

    params = make_up_params(k_p, in_ch, out_ch)
    fwd = make_up_forward(params, x1_shape=x1.shape, x2_shape=x2.shape)

    out = fwd(x1, x2)
    jax.block_until_ready(out)
    assert out.shape == (N, out_ch, 16, 16), out.shape
    print("KERNEL_OK")
</pallas_src>

<mosaic_0001>
module attributes {stable_mosaic.version = 11 : i64} {
  func.func @up_fused_kernel(%arg0: i32, %arg1: memref<1x4x128xf32, #tpu.memory_space<vmem>>, %arg2: memref<1x4x512xf32, #tpu.memory_space<vmem>>, %arg3: memref<128x512xbf16, #tpu.memory_space<vmem>>, %arg4: memref<72x512xf32, #tpu.memory_space<vmem>>, %arg5: memref<72x512xf32, #tpu.memory_space<vmem>>, %arg6: memref<8x72xbf16, #tpu.memory_space<vmem>>, %arg7: memref<8x1xf32, #tpu.memory_space<vmem>>, %arg8: memref<8x72xbf16, #tpu.memory_space<vmem>>, %arg9: memref<8x1xf32, #tpu.memory_space<vmem>>, %arg10: memref<1x8x512xf32, #tpu.memory_space<vmem>>) attributes {dimension_semantics = [#tpu.dimension_semantics<parallel>], iteration_bounds = array<i64: 1>, scalar_prefetch = 0 : i64, scratch_operands = 0 : i64, tpu.core_type = #tpu.core_type<tc>, window_params = [{transform_indices = @transform_0, window_bounds = array<i64: 1, 4, 128>}, {transform_indices = @transform_1, window_bounds = array<i64: 1, 4, 512>}, {pipeline_mode = #tpu.pipeline_mode<synchronous>, transform_indices = @transform_2, window_bounds = array<i64: 128, 512>}, {pipeline_mode = #tpu.pipeline_mode<synchronous>, transform_indices = @transform_3, window_bounds = array<i64: 72, 512>}, {pipeline_mode = #tpu.pipeline_mode<synchronous>, transform_indices = @transform_4, window_bounds = array<i64: 72, 512>}, {pipeline_mode = #tpu.pipeline_mode<synchronous>, transform_indices = @transform_5, window_bounds = array<i64: 8, 72>}, {pipeline_mode = #tpu.pipeline_mode<synchronous>, transform_indices = @transform_6, window_bounds = array<i64: 8, 1>}, {pipeline_mode = #tpu.pipeline_mode<synchronous>, transform_indices = @transform_7, window_bounds = array<i64: 8, 72>}, {pipeline_mode = #tpu.pipeline_mode<synchronous>, transform_indices = @transform_8, window_bounds = array<i64: 8, 1>}, {transform_indices = @transform_9, window_bounds = array<i64: 1, 8, 512>}]} {
    %c0 = arith.constant 0 : index
    %c0_0 = arith.constant 0 : index
    %c0_1 = arith.constant 0 : index
    %0 = vector.load %arg1[%c0, %c0_0, %c0_1] : memref<1x4x128xf32, #tpu.memory_space<vmem>>, vector<1x4x128xf32>
    %1 = vector.shape_cast %0 : vector<1x4x128xf32> to vector<4x128xf32>
    %2 = arith.truncf %1 : vector<4x128xf32> to vector<4x128xbf16>
    %c0_2 = arith.constant 0 : index
    %c0_3 = arith.constant 0 : index
    %3 = vector.load %arg3[%c0_2, %c0_3] : memref<128x512xbf16, #tpu.memory_space<vmem>>, vector<128x512xbf16>
    %cst = arith.constant dense<0.000000e+00> : vector<4x512xf32>
    %4 = tpu.matmul %2, %3, %cst {dimension_numbers = #tpu.dot_dimension_numbers<[1], [0], [0], [1], [0, 0, 1, 1], [], []>} : vector<4x128xbf16>, vector<128x512xbf16>, vector<4x512xf32> -> vector<4x512xf32>
    %c0_4 = arith.constant 0 : index
    %c0_5 = arith.constant 0 : index
    %c0_6 = arith.constant 0 : index
    %5 = vector.load %arg2[%c0_4, %c0_5, %c0_6] : memref<1x4x512xf32, #tpu.memory_space<vmem>>, vector<1x4x512xf32>
    %6 = vector.shape_cast %5 : vector<1x4x512xf32> to vector<4x512xf32>
    %7 = tpu.concatenate %6, %4 in 0 : vector<4x512xf32>, vector<4x512xf32> -> vector<8x512xf32>
    %c17_i32 = arith.constant 17 : i32
    %8 = tpu.dynamic_rotate %7 by %c17_i32 dim 1 : vector<8x512xf32>, i32 -> vector<8x512xf32>
    %c16_i32 = arith.constant 16 : i32
    %9 = tpu.dynamic_rotate %7 by %c16_i32 dim 1 : vector<8x512xf32>, i32 -> vector<8x512xf32>
    %c15_i32 = arith.constant 15 : i32
    %10 = tpu.dynamic_rotate %7 by %c15_i32 dim 1 : vector<8x512xf32>, i32 -> vector<8x512xf32>
    %c1_i32 = arith.constant 1 : i32
    %11 = tpu.dynamic_rotate %7 by %c1_i32 dim 1 : vector<8x512xf32>, i32 -> vector<8x512xf32>
    %c511_i32 = arith.constant 511 : i32
    %12 = tpu.dynamic_rotate %7 by %c511_i32 dim 1 : vector<8x512xf32>, i32 -> vector<8x512xf32>
    %c497_i32 = arith.constant 497 : i32
    %13 = tpu.dynamic_rotate %7 by %c497_i32 dim 1 : vector<8x512xf32>, i32 -> vector<8x512xf32>
    %c496_i32 = arith.constant 496 : i32
    %14 = tpu.dynamic_rotate %7 by %c496_i32 dim 1 : vector<8x512xf32>, i32 -> vector<8x512xf32>
    %c495_i32 = arith.constant 495 : i32
    %15 = tpu.dynamic_rotate %7 by %c495_i32 dim 1 : vector<8x512xf32>, i32 -> vector<8x512xf32>
    %16 = tpu.concatenate %8, %9, %10, %11, %7, %12, %13, %14, %15 in 0 : vector<8x512xf32>, vector<8x512xf32>, vector<8x512xf32>, vector<8x512xf32>, vector<8x512xf32>, vector<8x512xf32>, vector<8x512xf32>, vector<8x512xf32>, vector<8x512xf32> -> vector<72x512xf32>
    %c0_7 = arith.constant 0 : index
    %c0_8 = arith.constant 0 : index
    %17 = vector.load %arg4[%c0_7, %c0_8] : memref<72x512xf32, #tpu.memory_space<vmem>>, vector<72x512xf32>
    %18 = arith.mulf %16, %17 : vector<72x512xf32>
    %c0_9 = arith.constant 0 : index
    %c0_10 = arith.constant 0 : index
    %19 = vector.load %arg6[%c0_9, %c0_10] : memref<8x72xbf16, #tpu.memory_space<vmem>>, vector<8x72xbf16>
    %20 = arith.truncf %18 : vector<72x512xf32> to vector<72x512xbf16>
    %cst_11 = arith.constant dense<0.000000e+00> : vector<8x512xf32>
    %21 = tpu.matmul %19, %20, %cst_11 {dimension_numbers = #tpu.dot_dimension_numbers<[1], [0], [0], [1], [0, 0, 1, 1], [], []>} : vector<8x72xbf16>, vector<72x512xbf16>, vector<8x512xf32> -> vector<8x512xf32>
    %c0_12 = arith.constant 0 : index
    %c0_13 = arith.constant 0 : index
    %22 = vector.load %arg7[%c0_12, %c0_13] : memref<8x1xf32, #tpu.memory_space<vmem>>, vector<8x1xf32>
    %23 = vector.broadcast %22 : vector<8x1xf32> to vector<8x512xf32>
    %24 = arith.addf %21, %23 : vector<8x512xf32>
    %cst_14 = arith.constant 0.000000e+00 : f32
    %25 = vector.broadcast %cst_14 : f32 to vector<8x512xf32>
    %26 = arith.maximumf %24, %25 : vector<8x512xf32>
    %c17_i32_15 = arith.constant 17 : i32
    %27 = tpu.dynamic_rotate %26 by %c17_i32_15 dim 1 : vector<8x512xf32>, i32 -> vector<8x512xf32>
    %c16_i32_16 = arith.constant 16 : i32
    %28 = tpu.dynamic_rotate %26 by %c16_i32_16 dim 1 : vector<8x512xf32>, i32 -> vector<8x512xf32>
    %c15_i32_17 = arith.constant 15 : i32
    %29 = tpu.dynamic_rotate %26 by %c15_i32_17 dim 1 : vector<8x512xf32>, i32 -> vector<8x512xf32>
    %c1_i32_18 = arith.constant 1 : i32
    %30 = tpu.dynamic_rotate %26 by %c1_i32_18 dim 1 : vector<8x512xf32>, i32 -> vector<8x512xf32>
    %c511_i32_19 = arith.constant 511 : i32
    %31 = tpu.dynamic_rotate %26 by %c511_i32_19 dim 1 : vector<8x512xf32>, i32 -> vector<8x512xf32>
    %c497_i32_20 = arith.constant 497 : i32
    %32 = tpu.dynamic_rotate %26 by %c497_i32_20 dim 1 : vector<8x512xf32>, i32 -> vector<8x512xf32>
    %c496_i32_21 = arith.constant 496 : i32
    %33 = tpu.dynamic_rotate %26 by %c496_i32_21 dim 1 : vector<8x512xf32>, i32 -> vector<8x512xf32>
    %c495_i32_22 = arith.constant 495 : i32
    %34 = tpu.dynamic_rotate %26 by %c495_i32_22 dim 1 : vector<8x512xf32>, i32 -> vector<8x512xf32>
    %35 = tpu.concatenate %27, %28, %29, %30, %26, %31, %32, %33, %34 in 0 : vector<8x512xf32>, vector<8x512xf32>, vector<8x512xf32>, vector<8x512xf32>, vector<8x512xf32>, vector<8x512xf32>, vector<8x512xf32>, vector<8x512xf32>, vector<8x512xf32> -> vector<72x512xf32>
    %c0_23 = arith.constant 0 : index
    %c0_24 = arith.constant 0 : index
    %36 = vector.load %arg5[%c0_23, %c0_24] : memref<72x512xf32, #tpu.memory_space<vmem>>, vector<72x512xf32>
    %37 = arith.mulf %35, %36 : vector<72x512xf32>
    %c0_25 = arith.constant 0 : index
    %c0_26 = arith.constant 0 : index
    %38 = vector.load %arg8[%c0_25, %c0_26] : memref<8x72xbf16, #tpu.memory_space<vmem>>, vector<8x72xbf16>
    %39 = arith.truncf %37 : vector<72x512xf32> to vector<72x512xbf16>
    %cst_27 = arith.constant dense<0.000000e+00> : vector<8x512xf32>
    %40 = tpu.matmul %38, %39, %cst_27 {dimension_numbers = #tpu.dot_dimension_numbers<[1], [0], [0], [1], [0, 0, 1, 1], [], []>} : vector<8x72xbf16>, vector<72x512xbf16>, vector<8x512xf32> -> vector<8x512xf32>
    %c0_28 = arith.constant 0 : index
    %c0_29 = arith.constant 0 : index
    %41 = vector.load %arg9[%c0_28, %c0_29] : memref<8x1xf32, #tpu.memory_space<vmem>>, vector<8x1xf32>
    %42 = vector.broadcast %41 : vector<8x1xf32> to vector<8x512xf32>
    %43 = arith.addf %40, %42 : vector<8x512xf32>
    %cst_30 = arith.constant 0.000000e+00 : f32
    %44 = vector.broadcast %cst_30 : f32 to vector<8x512xf32>
    %45 = arith.maximumf %43, %44 : vector<8x512xf32>
    %c0_31 = arith.constant 0 : index
    %c0_32 = arith.constant 0 : index
    %c0_33 = arith.constant 0 : index
    %46 = vector.load %arg10[%c0_31, %c0_32, %c0_33] : memref<1x8x512xf32, #tpu.memory_space<vmem>>, vector<1x8x512xf32>
    %47 = vector.shape_cast %46 : vector<1x8x512xf32> to vector<8x512xf32>
    %48 = vector.shape_cast %45 : vector<8x512xf32> to vector<1x8x512xf32>
    tpu.vector_store %arg10[%c0_31, %c0_32, %c0_33], %48 {strides = array<i32>} : memref<1x8x512xf32, #tpu.memory_space<vmem>>, vector<1x8x512xf32>,
    return
  }
  func.func @transform_0(%arg0: i32) -> (i32, i32, i32) {
    %c0_i32 = arith.constant 0 : i32
    %c0_i32_0 = arith.constant 0 : i32
    %c0_i32_1 = arith.constant 0 : i32
    return %arg0, %c0_i32, %c0_i32_0 : i32, i32, i32
  }
  func.func @transform_1(%arg0: i32) -> (i32, i32, i32) {
    %c0_i32 = arith.constant 0 : i32
    %c0_i32_0 = arith.constant 0 : i32
    %c0_i32_1 = arith.constant 0 : i32
    return %arg0, %c0_i32, %c0_i32_0 : i32, i32, i32
  }
  func.func @transform_2(%arg0: i32) -> (i32, i32) {
    %c0_i32 = arith.constant 0 : i32
    %c0_i32_0 = arith.constant 0 : i32
    %c0_i32_1 = arith.constant 0 : i32
    return %c0_i32, %c0_i32_0 : i32, i32
  }
  func.func @transform_3(%arg0: i32) -> (i32, i32) {
    %c0_i32 = arith.constant 0 : i32
    %c0_i32_0 = arith.constant 0 : i32
    %c0_i32_1 = arith.constant 0 : i32
    return %c0_i32, %c0_i32_0 : i32, i32
  }
  func.func @transform_4(%arg0: i32) -> (i32, i32) {
    %c0_i32 = arith.constant 0 : i32
    %c0_i32_0 = arith.constant 0 : i32
    %c0_i32_1 = arith.constant 0 : i32
    return %c0_i32, %c0_i32_0 : i32, i32
  }
  func.func @transform_5(%arg0: i32) -> (i32, i32) {
    %c0_i32 = arith.constant 0 : i32
    %c0_i32_0 = arith.constant 0 : i32
    %c0_i32_1 = arith.constant 0 : i32
    return %c0_i32, %c0_i32_0 : i32, i32
  }
  func.func @transform_6(%arg0: i32) -> (i32, i32) {
    %c0_i32 = arith.constant 0 : i32
    %c0_i32_0 = arith.constant 0 : i32
    %c0_i32_1 = arith.constant 0 : i32
    return %c0_i32, %c0_i32_0 : i32, i32
  }
  func.func @transform_7(%arg0: i32) -> (i32, i32) {
    %c0_i32 = arith.constant 0 : i32
    %c0_i32_0 = arith.constant 0 : i32
    %c0_i32_1 = arith.constant 0 : i32
    return %c0_i32, %c0_i32_0 : i32, i32
  }
  func.func @transform_8(%arg0: i32) -> (i32, i32) {
    %c0_i32 = arith.constant 0 : i32
    %c0_i32_0 = arith.constant 0 : i32
    %c0_i32_1 = arith.constant 0 : i32
    return %c0_i32, %c0_i32_0 : i32, i32
  }
  func.func @transform_9(%arg0: i32) -> (i32, i32, i32) {
    %c0_i32 = arith.constant 0 : i32
    %c0_i32_0 = arith.constant 0 : i32
    %c0_i32_1 = arith.constant 0 : i32
    return %arg0, %c0_i32, %c0_i32_0 : i32, i32, i32
  }
}

</mosaic_0001>

<bundles_post_ra>
// kernel: forward.1
= control target key start
LH: loop header
LB: loop body
LE: loop exit
PB: predicated region body
PF: predicated region fallthrough
CT: control target
= control target key end

     0   :  { %v1045_v1 = vmov 0   ;;  %vm329_vm0 = vcmask 1043456   ;;  %s1046_s14 = smov 17   ;;  %s1048_s15 = smov 15   ;;  %v342_v58 = vlaneseq  ;;  %vm539_vm9 = vcmask 588800   ;;  %s1811_s2 = inlined_call_operand.vmem [shape: bf16[128,512], index: 2, kind: input, shape index: {}]   ;;  %s1812_s0 = inlined_call_operand.vmem [shape: f32[1,4,128], index: 0, kind: input, shape index: {}]   ;;  %s1813_s1 = inlined_call_operand.vmem [shape: f32[1,4,512], index: 1, kind: input, shape index: {}]   ;;  %s1814_s6 = inlined_call_operand.vmem [shape: f32[8,1], index: 6, kind: input, shape index: {}]   ;;  %s1815_s3 = inlined_call_operand.vmem [shape: f32[72,512], index: 3, kind: input, shape index: {}, may-alias: {3,4}]   ;;  %s1816_s5 = inlined_call_operand.vmem [shape: bf16[8,72], index: 5, kind: input, shape index: {}]   ;;  %s1817_s8 = inlined_call_operand.vmem [shape: f32[8,1], index: 8, kind: input, shape index: {}]   ;;  %s1818_s4 = inlined_call_operand.vmem [shape: f32[72,512], index: 4, kind: input, shape index: {}, may-alias: {3,4}]   ;;  %s1819_s7 = inlined_call_operand.vmem [shape: bf16[8,72], index: 7, kind: input, shape index: {}]   ;;  %s1820_s9 = inlined_call_operand.vmem [shape: f32[1,8,512], index: 9, kind: output, shape index: {}]  }
   0x1   :  { %v995_v0 = vld [vmem:[%s1811_s2 + $0x4] ss:$16 sps:$4 sm:$0xff]   ;;  %259 = vmatprep.mubr.bf16.mxu0 %v1045_v1  ;;  %300 = vmatprep.mubr.bf16.mxu1 %v1045_v1  ;;  %v997_v2 = vld [vmem:[%s1811_s2 + $0xc] ss:$16 sps:$4 sm:$0xff]   ;;  %v999_v3 = vld [vmem:[%s1811_s2] ss:$16 sps:$4 sm:$0xff]  }
   0x2   :  { %994 = vset.pattern.permute.xlu0 %v1045_v1  ;;  %227 = vmatprep.subr.bf16.mxu0 %v995_v0  ;;  %v1000_v4 = vld [vmem:[%s1811_s2 + $0x8] ss:$16 sps:$4 sm:$0xff]   ;;  %v1001_v5 = vld [vmem:[%s1811_s2 + $0x24] ss:$16 sps:$4 sm:$0xff]   ;;  %v1003_v6 = vld [vmem:[%s1811_s2 + $0x2c] ss:$16 sps:$4 sm:$0xff]  }
   0x3   :  { %268 = vmatprep.subr.bf16.mxu1 %v997_v2  ;;  %228 = vmatpush1.bf16.msra.mxu0 %v999_v3  ;;  %v1005_v7 = vld [vmem:[%s1811_s2 + $0x20] ss:$16 sps:$4 sm:$0xff]   ;;  %v1006_v8 = vld [vmem:[%s1811_s2 + $0x28] ss:$16 sps:$4 sm:$0xff]   ;;  %v1007_v9 = vld [vmem:[%s1811_s2 + $0x44] ss:$16 sps:$4 sm:$0xff]  }
   0x4   :  { %269 = vmatpush1.bf16.msra.mxu1 %v1000_v4  ;;  %229 = vmatprep.subr.bf16.mxu0 %v1001_v5  ;;  %v1009_v10 = vld [vmem:[%s1811_s2 + $0x4c] ss:$16 sps:$4 sm:$0xff]   ;;  %v1011_v11 = vld [vmem:[%s1811_s2 + $0x40] ss:$16 sps:$4 sm:$0xff]   ;;  %v1012_v12 = vld [vmem:[%s1811_s2 + $0x48] ss:$16 sps:$4 sm:$0xff]  }
   0x5   :  { %270 = vmatprep.subr.bf16.mxu1 %v1003_v6  ;;  %v1013_v13 = vld [vmem:[%s1811_s2 + $0x64] ss:$16 sps:$4 sm:$0xff]   ;;  %v1015_v14 = vld [vmem:[%s1811_s2 + $0x6c] ss:$16 sps:$4 sm:$0xff]   ;;  %v1017_v15 = vld [vmem:[%s1811_s2 + $0x60] ss:$16 sps:$4 sm:$0xff]  }
   0x6   :  { %v1018_v16 = vld [vmem:[%s1811_s2 + $0x68] ss:$16 sps:$4 sm:$0xff]   ;;  %v1019_v17 = vld [vmem:[%s1811_s2 + $0x84] ss:$16 sps:$4 sm:$0xff]   ;;  %v1021_v18 = vld [vmem:[%s1811_s2 + $0x8c] ss:$16 sps:$4 sm:$0xff]  }
   0x7   :  { %230 = vmatpush1.bf16.msra.mxu0 %v1005_v7  ;;  %v1023_v19 = vld [vmem:[%s1811_s2 + $0x80] ss:$16 sps:$4 sm:$0xff]   ;;  %v1024_v20 = vld [vmem:[%s1811_s2 + $0x88] ss:$16 sps:$4 sm:$0xff]   ;;  %v1025_v21 = vld [vmem:[%s1811_s2 + $0xa4] ss:$16 sps:$4 sm:$0xff]  }
   0x8   :  { %271 = vmatpush1.bf16.msra.mxu1 %v1006_v8  ;;  %231 = vmatprep.subr.bf16.mxu0 %v1007_v9  ;;  %v1027_v22 = vld [vmem:[%s1811_s2 + $0xac] ss:$16 sps:$4 sm:$0xff]   ;;  %v1029_v23 = vld [vmem:[%s1811_s2 + $0xa0] ss:$16 sps:$4 sm:$0xff]   ;;  %v1030_v24 = vld [vmem:[%s1811_s2 + $0xa8] ss:$16 sps:$4 sm:$0xff]  }
   0x9   :  { %272 = vmatprep.subr.bf16.mxu1 %v1009_v10  ;;  %v1031_v25 = vld [vmem:[%s1811_s2 + $0xc4] ss:$16 sps:$4 sm:$0xff]   ;;  %v1033_v26 = vld [vmem:[%s1811_s2 + $0xcc] ss:$16 sps:$4 sm:$0xff]   ;;  %v1035_v27 = vld [vmem:[%s1811_s2 + $0xc0] ss:$16 sps:$4 sm:$0xff]  }
   0xa   :  { %v1036_v28 = vld [vmem:[%s1811_s2 + $0xc8] ss:$16 sps:$4 sm:$0xff]   ;;  %v1037_v29 = vld [vmem:[%s1811_s2 + $0xe4] ss:$16 sps:$4 sm:$0xff]   ;;  %v1039_v30 = vld [vmem:[%s1811_s2 + $0xec] ss:$16 sps:$4 sm:$0xff]  }
   0xb   :  { %232 = vmatpush1.bf16.msra.mxu0 %v1011_v11  ;;  %v1041_v31 = vld [vmem:[%s1811_s2 + $0xe0] ss:$16 sps:$4 sm:$0xff]   ;;  %v1042_v32 = vld [vmem:[%s1811_s2 + $0xe8] ss:$16 sps:$4 sm:$0xff]   ;;  %s1049_s16 = smov 1   ;;  %s1050_s17 = smov 127  }
   0xc   :  { %273 = vmatpush1.bf16.msra.mxu1 %v1012_v12  ;;  %233 = vmatprep.subr.bf16.mxu0 %v1013_v13  ;;  %v33_v33 = vld [vmem:[%s1812_s0] sm:$0xf]  ;;  %v310_v38 = vld [vmem:[%s1813_s1 + $0x8] sm:$0xff]  ;;  %s1051_s18 = smov 113   ;;  %s1052_s19 = smov 112   ;;  %v1297_v59 = vand.u32 127, %v342_v58 }
   0xd   :  { %274 = vmatprep.subr.bf16.mxu1 %v1015_v14  ;;  %v34_v34 = vpack.c.bf16 %v33_v33, %v33_v33  ;;  %v309_v36 = vld [vmem:[%s1813_s1] sm:$0xff]  ;;  %v314_v40 = vcombine.high %v310_v38, %v310_v38  ;;  %s1047_s1 = smov 16   ;;  %s1053_s20 = smov 111   ;;  %v443_v0 = vld [vmem:[%s1815_s3 + $0x18] sm:$0xff]  ;;  %v449_v33 = vld [vmem:[%s1815_s3 + $0x48] sm:$0xff] }
   0xe   :  { %v313_v52 = vcombine.high %v309_v36, %v309_v36  ;;  %v533_v55 = vld [vmem:[%s1814_s6] sm:$0xff]  ;;  %vm344_vm1 = vcmp.lt.s32.totalorder %v1297_v59, 17  ;;  %v447_v3 = vld [vmem:[%s1815_s3 + $0x38] sm:$0xff]  ;;  %vm357_vm2 = vcmp.lt.s32.totalorder %v1297_v59, 16  ;;  %vm370_vm3 = vcmp.lt.s32.totalorder %v1297_v59, 15 }
   0xf   :  { %234 = vmatpush1.bf16.msra.mxu0 %v1017_v15  ;;  %vm383_vm4 = vcmp.lt.s32.totalorder %v1297_v59, 1  ;;  %vm396_vm5 = vcmp.lt.s32.totalorder %v1297_v59, 127  ;;  %vm409_vm6 = vcmp.lt.s32.totalorder %v1297_v59, 113  ;;  %vm422_vm7 = vcmp.lt.s32.totalorder %v1297_v59, 112 }
  0x10   :  { %275 = vmatpush1.bf16.msra.mxu1 %v1018_v16  ;;  %235 = vmatprep.subr.bf16.mxu0 %v1019_v17  ;;  %vm435_vm8 = vcmp.lt.s32.totalorder %v1297_v59, 111 }
  0x11   :  { %276 = vmatprep.subr.bf16.mxu1 %v1021_v18 }
  0x13   :  { %236 = vmatpush1.bf16.msra.mxu0 %v1023_v19 }
  0x14   :  { %277 = vmatpush1.bf16.msra.mxu1 %v1024_v20  ;;  %237 = vmatprep.subr.bf16.mxu0 %v1025_v21 }
  0x15   :  { %278 = vmatprep.subr.bf16.mxu1 %v1027_v22  ;;  %v458_v22 = vld [vmem:[%s1815_s3 + $0x90] sm:$0xff] }
  0x17   :  { %238 = vmatpush1.bf16.msra.mxu0 %v1029_v23  ;;  %v459_v23 = vld [vmem:[%s1815_s3 + $0x98] sm:$0xff] }
  0x18   :  { %279 = vmatpush1.bf16.msra.mxu1 %v1030_v24  ;;  %239 = vmatprep.subr.bf16.mxu0 %v1031_v25  ;;  %v457_v24 = vld [vmem:[%s1815_s3 + $0x88] sm:$0xff]  ;;  %v440_v25 = vld [vmem:[%s1815_s3] sm:$0xff] }
  0x19   :  { %280 = vmatprep.subr.bf16.mxu1 %v1033_v26 }
  0x1b   :  { %240 = vmatpush1.bf16.msra.mxu0 %v1035_v27  ;;  %v445_v27 = vld [vmem:[%s1815_s3 + $0x28] sm:$0xff] }
  0x1c   :  { %281 = vmatpush1.bf16.msra.mxu1 %v1036_v28  ;;  %241 = vmatprep.subr.bf16.mxu0 %v1037_v29  ;;  %v446_v28 = vld [vmem:[%s1815_s3 + $0x30] sm:$0xff] }
  0x1d   :  { %282 = vmatprep.subr.bf16.mxu1 %v1039_v30 }
  0x1f   :  { %242 = vmatpush1.bf16.msra.mxu0 %v1041_v31  ;;  %v444_v31 = vld [vmem:[%s1815_s3 + $0x20] sm:$0xff] }
  0x20   :  { %283 = vmatpush1.bf16.msra.mxu1 %v1042_v32 }
  0x22   :  { %260 = vmatmul.mubr.bf16.vlgmr.msra.gmra.mrb[0].mxu0 %v34_v34 }
  0x23   :  { %301 = vmatmul.mubr.bf16.vlgmr.msra.gmra.mrb[0].mxu1 %v34_v34  ;;  %587 = vmatprep.mubr.bf16.mxu0 %v1045_v1 }
  0x24   :  { %628 = vmatprep.mubr.bf16.mxu1 %v1045_v1 }
  0xf5   :  { %v261_v35 = vpop.f32.mrb[0].mxu0 }
  0xf6   :  { %v302_v37 = vpop.f32.mrb[0].mxu1  ;;  %v321_v39 = vrot.slane %v261_v35, 4  ;;  %v263_v42 = vpop.f32.mrb[1].mxu0 }
  0xf7   :  { %v323_v41 = vrot.slane %v302_v37, 4  ;;  %v304_v43 = vpop.f32.mrb[1].mxu1  ;;  %v265_v44 = vpop.f32.mrb[2].mxu0  ;;  %v322_v53 = vrot.slane %v263_v42, 4 }
  0xf8   :  { %v324_v45 = vrot.slane %v304_v43, 4  ;;  %v306_v46 = vpop.f32.mrb[2].mxu1  ;;  %v1215_v47 = vsel %vm329_vm0, %v309_v36, %v321_v39  ;;  %v266_v49 = vpop.f32.mrb[3].mxu0  ;;  %v451_v43 = vld [vmem:[%s1815_s3 + $0x58] sm:$0xff] }
  0xf9   :  { %v1218_v48 = vsel %vm329_vm0, %v310_v38, %v323_v41  ;;  %v307_v50 = vpop.f32.mrb[3].mxu1  ;;  %334 = vrot.lane.b32.xlu0 %v1215_v47, %s1046_s14  ;;  %v1232_v54 = vsel %vm329_vm0, %v313_v52, %v322_v53  ;;  %v455_v44 = vld [vmem:[%s1815_s3 + $0x78] sm:$0xff]  ;;  %v441_v52 = vld [vmem:[%s1815_s3 + $0x8] sm:$0xff]  ;;  %v442_v53 = vld [vmem:[%s1815_s3 + $0x10] sm:$0xff] }
  0xfa   :  { %338 = vrot.lane.b32.xlu1 %v1218_v48, %s1046_s14  ;;  %v1225_v51 = vsel %vm329_vm0, %v314_v40, %v324_v45  ;;  %v1366_v37 = vmul.f32 %v458_v22, %v1218_v48  ;;  %v1372_v39 = vmul.f32 %v457_v24, %v1232_v54  ;;  %v453_v50 = vld [vmem:[%s1815_s3 + $0x68] sm:$0xff] }
  0xfb   :  { %v1369_v38 = vmul.f32 %v459_v23, %v1225_v51 }
  0xfd   :  { %349 = vrot.lane.b32.xlu0 %v1215_v47, %s1047_s1 }
  0xfe   :  { %340 = vrot.lane.b32.xlu1 %v1225_v51, %s1046_s14 }
 0x101   :  { %353 = vrot.lane.b32.xlu0 %v1218_v48, %s1047_s1 }
 0x102   :  { %351 = vrot.lane.b32.xlu1 %v1232_v54, %s1047_s1 }
 0x105   :  { %362 = vrot.lane.b32.xlu0 %v1215_v47, %s1048_s15 }
 0x106   :  { %355 = vrot.lane.b32.xlu1 %v1225_v51, %s1047_s1 }
 0x109   :  { %366 = vrot.lane.b32.xlu0 %v1218_v48, %s1048_s15 }
 0x10a   :  { %364 = vrot.lane.b32.xlu1 %v1232_v54, %s1048_s15 }
 0x10d   :  { %375 = vrot.lane.b32.xlu0 %v1215_v47, %s1049_s16 }
 0x10e   :  { %368 = vrot.lane.b32.xlu1 %v1225_v51, %s1048_s15 }
 0x111   :  { %379 = vrot.lane.b32.xlu0 %v1218_v48, %s1049_s16 }
 0x112   :  { %377 = vrot.lane.b32.xlu1 %v1232_v54, %s1049_s16 }
 0x115   :  { %388 = vrot.lane.b32.xlu0 %v1215_v47, %s1050_s17 }
 0x116   :  { %381 = vrot.lane.b32.xlu1 %v1225_v51, %s1049_s16 }
 0x119   :  { %392 = vrot.lane.b32.xlu0 %v1218_v48, %s1050_s17 }
 0x11a   :  { %390 = vrot.lane.b32.xlu1 %v1232_v54, %s1050_s17 }
 0x11d   :  { %401 = vrot.lane.b32.xlu0 %v1215_v47, %s1051_s18 }
 0x11e   :  { %394 = vrot.lane.b32.xlu1 %v1225_v51, %s1050_s17 }
 0x121   :  { %405 = vrot.lane.b32.xlu0 %v1218_v48, %s1051_s18 }
 0x122   :  { %403 = vrot.lane.b32.xlu1 %v1232_v54, %s1051_s18 }
 0x125   :  { %336 = vrot.lane.b32.xlu0 %v1232_v54, %s1046_s14 }
 0x126   :  { %407 = vrot.lane.b32.xlu1 %v1225_v51, %s1051_s18 }
 0x129   :  { %414 = vrot.lane.b32.xlu0 %v1215_v47, %s1052_s19 }
 0x12a   :  { %416 = vrot.lane.b32.xlu1 %v1232_v54, %s1052_s19 }
 0x12d   :  { %418 = vrot.lane.b32.xlu0 %v1218_v48, %s1052_s19 }
 0x12e   :  { %420 = vrot.lane.b32.xlu1 %v1225_v51, %s1052_s19 }
 0x131   :  { %427 = vrot.lane.b32.xlu0 %v1215_v47, %s1053_s20 }
 0x132   :  { %429 = vrot.lane.b32.xlu1 %v1232_v54, %s1053_s20 }
 0x135   :  { %431 = vrot.lane.b32.xlu0 %v1218_v48, %s1053_s20 }
 0x136   :  { %433 = vrot.lane.b32.xlu1 %v1225_v51, %s1053_s20 }
 0x139   :  { %536 = vperm.xlu0 %994, %v533_v55   ;;  %v454_v55 = vld [vmem:[%s1815_s3 + $0x70] sm:$0xff] }
 0x16b   :  { %v1295_v57 = vpop.permute.xlu0 %334 }
 0x16c   :  { %v1293_v56 = vpop.permute.xlu1 %338 }
 0x16f   :  { %v350_v61 = vpop.permute.xlu0 %349 }
 0x170   :  { %v341_v60 = vpop.permute.xlu1 %340 }
 0x171   :  { %v345_v2 = vsel %vm344_vm1, %v1293_v56, %v341_v60  ;;  %v348_v26 = vsel %vm344_vm1, %v341_v60, %v1295_v57  ;;  %v452_v60 = vld [vmem:[%s1815_s3 + $0x60] sm:$0xff] }
 0x172   :  { %v479_v7 = vmul.f32 %v443_v0, %v345_v2  ;;  %v476_v40 = vmul.f32 %v440_v25, %v348_v26 }
 0x173   :  { %v354_v62 = vpop.permute.xlu0 %353 }
 0x174   :  { %v352_v63 = vpop.permute.xlu1 %351 }
 0x175   :  { %v359_v29 = vsel %vm357_vm2, %v352_v63, %v354_v62  ;;  %v360_v30 = vsel %vm357_vm2, %v350_v61, %v352_v63 }
 0x176   :  { %v481_v41 = vmul.f32 %v445_v27, %v360_v30  ;;  %v482_v42 = vmul.f32 %v446_v28, %v359_v29  ;;  %v460_v30 = vld [vmem:[%s1815_s3 + $0xa0] sm:$0xff] }
 0x177   :  { %v1310_v4 = vpop.permute.xlu0 %362 }
 0x178   :  { %v356_v5 = vpop.permute.xlu1 %355 }
 0x179   :  { %v358_v6 = vsel %vm357_vm2, %v354_v62, %v356_v5  ;;  %v361_v32 = vsel %vm357_vm2, %v356_v5, %v350_v61  ;;  %v461_v62 = vld [vmem:[%s1815_s3 + $0xa8] sm:$0xff]  ;;  %v463_v5 = vld [vmem:[%s1815_s3 + $0xb8] sm:$0xff] }
 0x17a   :  { %v483_v8 = vmul.f32 %v447_v3, %v358_v6  ;;  %v480_v46 = vmul.f32 %v444_v31, %v361_v32 }
 0x17b   :  { %v367_v9 = vpop.permute.xlu0 %366 }
 0x17c   :  { %v365_v10 = vpop.permute.xlu1 %364  ;;  %v516_v11 = vpack.c.bf16 %v483_v8, %v479_v7  ;;  %v513_v28 = vpack.c.bf16 %v480_v46, %v476_v40  ;;  %v467_v40 = vld [vmem:[%s1815_s3 + $0xd8] sm:$0xff] }
 0x17d   :  { %v373_v34 = vsel %vm370_vm3, %v1310_v4, %v365_v10  ;;  %v372_v48 = vsel %vm370_vm3, %v365_v10, %v367_v9 }
 0x17e   :  { %596 = vmatprep.subr.bf16.mxu1 %v516_v11  ;;  %v485_v49 = vmul.f32 %v449_v33, %v373_v34 }
 0x17f   :  { %v376_v12 = vpop.permute.xlu0 %375 }
 0x180   :  { %v369_v13 = vpop.permute.xlu1 %368 }
 0x181   :  { %v371_v54 = vsel %vm370_vm3, %v367_v9, %v369_v13  ;;  %v450_v9 = vld [vmem:[%s1815_s3 + $0x50] sm:$0xff]  ;;  %v374_v10 = vsel %vm370_vm3, %v369_v13, %v1310_v4 }
 0x182   :  { %v486_v29 = vmul.f32 %v450_v9, %v372_v48 }
 0x183   :  { %v380_v14 = vpop.permute.xlu0 %379 }
 0x184   :  { %v378_v15 = vpop.permute.xlu1 %377 }
 0x185   :  { %v386_v51 = vsel %vm383_vm4, %v376_v12, %v378_v15  ;;  %v385_v58 = vsel %vm383_vm4, %v378_v15, %v380_v14  ;;  %v448_v15 = vld [vmem:[%s1815_s3 + $0x40] sm:$0xff] }
 0x186   :  { %v489_v11 = vmul.f32 %v453_v50, %v386_v51  ;;  %v484_v33 = vmul.f32 %v448_v15, %v374_v10  ;;  %v465_v50 = vld [vmem:[%s1815_s3 + $0xc8] sm:$0xff] }
 0x187   :  { %v1314_v16 = vpop.permute.xlu0 %388 }
 0x188   :  { %v382_v17 = vpop.permute.xlu1 %381 }
 0x189   :  { %v384_v45 = vsel %vm383_vm4, %v380_v14, %v382_v17  ;;  %v387_v61 = vsel %vm383_vm4, %v382_v17, %v376_v12  ;;  %v490_v17 = vmul.f32 %v454_v55, %v385_v58  ;;  %v468_v55 = vld [vmem:[%s1815_s3 + $0xe0] sm:$0xff] }
 0x18a   :  { %v491_v3 = vmul.f32 %v455_v44, %v384_v45  ;;  %v488_v22 = vmul.f32 %v452_v60, %v387_v61 }
 0x18b   :  { %v1316_v18 = vpop.permute.xlu0 %392 }
 0x18c   :  { %v1318_v19 = vpop.permute.xlu1 %390 }
 0x18d   :  { %v398_v63 = vsel %vm396_vm5, %v1318_v19, %v1316_v18  ;;  %v399_v31 = vsel %vm396_vm5, %v1314_v16, %v1318_v19  ;;  %v471_v19 = vld [vmem:[%s1815_s3 + $0xf8] sm:$0xff] }
 0x18e   :  { %v497_v23 = vmul.f32 %v461_v62, %v398_v63  ;;  %v496_v44 = vmul.f32 %v460_v30, %v399_v31 }
 0x18f   :  { %v1320_v20 = vpop.permute.xlu0 %401 }
 0x190   :  { %v395_v21 = vpop.permute.xlu1 %394 }
 0x191   :  { %v400_v6 = vsel %vm396_vm5, %v395_v21, %v1314_v16  ;;  %v397_v24 = vsel %vm396_vm5, %v1316_v18, %v395_v21  ;;  %v518_v18 = vpack.c.bf16 %v489_v11, %v485_v49  ;;  %v519_v21 = vpack.c.bf16 %v490_v17, %v486_v29  ;;  %v474_v17 = vld [vmem:[%s1815_s3 + $0x110] sm:$0xff] }
 0x192   :  { %v499_v4 = vmul.f32 %v463_v5, %v400_v6  ;;  %v522_v49 = vpack.c.bf16 %v497_v23, %v1372_v39  ;;  %v472_v5 = vld [vmem:[%s1815_s3 + $0x100] sm:$0xff] }
 0x193   :  { %v1360_v35 = vpop.permute.xlu0 %405 }
 0x194   :  { %v1362_v36 = vpop.permute.xlu1 %403  ;;  %v524_v48 = vpack.c.bf16 %v499_v4, %v1369_v38 }
 0x195   :  { %v411_v51 = vsel %vm409_vm6, %v1362_v36, %v1360_v35 }
 0x196   :  { %v501_v6 = vmul.f32 %v465_v50, %v411_v51 }
 0x197   :  { %v337_v2 = vpop.permute.xlu0 %336 }
 0x198   :  { %v1414_v0 = vpop.permute.xlu1 %407  ;;  %v346_v7 = vsel %vm344_vm1, %v337_v2, %v1293_v56  ;;  %v347_v8 = vsel %vm344_vm1, %v1295_v57, %v337_v2  ;;  %v487_v56 = vmul.f32 %v451_v43, %v371_v54  ;;  %v462_v57 = vld [vmem:[%s1815_s3 + $0xb0] sm:$0xff]  ;;  %v456_v43 = vld [vmem:[%s1815_s3 + $0x80] sm:$0xff] }
 0x199   :  { %v477_v12 = vmul.f32 %v441_v52, %v347_v8  ;;  %v478_v14 = vmul.f32 %v442_v53, %v346_v7  ;;  %v498_v34 = vmul.f32 %v462_v57, %v397_v24  ;;  %v413_v16 = vsel %vm409_vm6, %v1414_v0, %v1320_v20  ;;  %v470_v53 = vld [vmem:[%s1815_s3 + $0xf0] sm:$0xff] }
 0x19a   :  { %v520_v32 = vpack.c.bf16 %v491_v3, %v487_v56  ;;  %v503_v54 = vmul.f32 %v467_v40, %v413_v16  ;;  %v492_v62 = vmul.f32 %v456_v43, %v1215_v47  ;;  %v466_v2 = vld [vmem:[%s1815_s3 + $0xd0] sm:$0xff]  ;;  %v410_v3 = vsel %vm409_vm6, %v1360_v35, %v1414_v0  ;;  %v464_v47 = vld [vmem:[%s1815_s3 + $0xc0] sm:$0xff] }
 0x19b   :  { %v515_v13 = vpack.c.bf16 %v482_v42, %v478_v14  ;;  %v415_v26 = vpop.permute.xlu0 %414  ;;  %v514_v27 = vpack.c.bf16 %v481_v41, %v477_v12  ;;  %v469_v41 = vld [vmem:[%s1815_s3 + $0xe8] sm:$0xff]  ;;  %v517_v42 = vpack.c.bf16 %v488_v22, %v484_v33  ;;  %v523_v63 = vpack.c.bf16 %v498_v34, %v1366_v37 }
 0x19c   :  { %v417_v25 = vpop.permute.xlu1 %416  ;;  %v412_v37 = vsel %vm409_vm6, %v1320_v20, %v1362_v36  ;;  %v521_v0 = vpack.c.bf16 %v496_v44, %v492_v62  ;;  %v502_v12 = vmul.f32 %v466_v2, %v410_v3  ;;  %v475_v20 = vld [vmem:[%s1815_s3 + $0x118] sm:$0xff]  ;;  %v473_v36 = vld [vmem:[%s1815_s3 + $0x108] sm:$0xff] }
 0x19d   :  { %555 = vmatprep.subr.bf16.mxu0 %v514_v27  ;;  %597 = vmatpush1.bf16.msra.mxu1 %v515_v13  ;;  %v425_v58 = vsel %vm422_vm7, %v415_v26, %v417_v25  ;;  %v500_v56 = vmul.f32 %v464_v47, %v412_v37  ;;  %v738_v62 = vld [vmem:[%s1818_s4 + $0x8] sm:$0xff] }
 0x19e   :  { %556 = vmatpush1.bf16.msra.mxu0 %v513_v28  ;;  %598 = vmatprep.subr.bf16.mxu1 %v520_v32  ;;  %v504_v10 = vmul.f32 %v468_v55, %v425_v58  ;;  %v742_v2 = vld [vmem:[%s1818_s4 + $0x28] sm:$0xff] }
 0x19f   :  { %557 = vmatprep.subr.bf16.mxu0 %v518_v18  ;;  %v419_v46 = vpop.permute.xlu0 %418 }
 0x1a0   :  { %v421_v45 = vpop.permute.xlu1 %420  ;;  %v424_v39 = vsel %vm422_vm7, %v417_v25, %v419_v46  ;;  %v525_v24 = vpack.c.bf16 %v504_v10, %v500_v56 }
 0x1a1   :  { %v426_v52 = vsel %vm422_vm7, %v421_v45, %v415_v26  ;;  %v423_v38 = vsel %vm422_vm7, %v419_v46, %v421_v45  ;;  %v505_v61 = vmul.f32 %v469_v41, %v424_v39  ;;  %599 = vmatpush1.bf16.msra.mxu1 %v519_v21  ;;  %v512_v21 = vld [vmem:[%s1816_s5] sm:$0xf] }
 0x1a2   :  { %v507_v60 = vmul.f32 %v471_v19, %v426_v52  ;;  %558 = vmatpush1.bf16.msra.mxu0 %v517_v42  ;;  %600 = vmatprep.subr.bf16.mxu1 %v524_v48  ;;  %v506_v7 = vmul.f32 %v470_v53, %v423_v38  ;;  %v830_v38 = vld [vmem:[%s1817_s8] sm:$0xff] }
 0x1a3   :  { %v428_v9 = vpop.permute.xlu0 %427  ;;  %559 = vmatprep.subr.bf16.mxu0 %v522_v49  ;;  %v526_v15 = vpack.c.bf16 %v505_v61, %v501_v6  ;;  %v737_v6 = vld [vmem:[%s1818_s4] sm:$0xff] }
 0x1a4   :  { %v430_v8 = vpop.permute.xlu1 %429  ;;  %v528_v35 = vpack.c.bf16 %v507_v60, %v503_v54  ;;  %v527_v22 = vpack.c.bf16 %v506_v7, %v502_v12  ;;  %v743_v7 = vld [vmem:[%s1818_s4 + $0x30] sm:$0xff]  ;;  %v744_v12 = vld [vmem:[%s1818_s4 + $0x38] sm:$0xff] }
 0x1a5   :  { %v438_v11 = vsel %vm435_vm8, %v428_v9, %v430_v8  ;;  %601 = vmatpush1.bf16.msra.mxu1 %v523_v63 }
 0x1a6   :  { %v508_v14 = vmul.f32 %v472_v5, %v438_v11  ;;  %560 = vmatpush1.bf16.msra.mxu0 %v521_v0  ;;  %602 = vmatprep.subr.bf16.mxu1 %v528_v35  ;;  %v740_v35 = vld [vmem:[%s1818_s4 + $0x18] sm:$0xff]  ;;  %v741_v11 = vld [vmem:[%s1818_s4 + $0x20] sm:$0xff] }
 0x1a7   :  { %v432_v57 = vpop.permute.xlu0 %431  ;;  %561 = vmatprep.subr.bf16.mxu0 %v526_v15 }
 0x1a8   :  { %v434_v23 = vpop.permute.xlu1 %433  ;;  %v437_v25 = vsel %vm435_vm8, %v430_v8, %v432_v57  ;;  %v529_v26 = vpack.c.bf16 %v508_v14, %v508_v14  ;;  %v739_v14 = vld [vmem:[%s1818_s4 + $0x10] sm:$0xff] }
 0x1a9   :  { %v439_v4 = vsel %vm435_vm8, %v434_v23, %v428_v9  ;;  %v436_v13 = vsel %vm435_vm8, %v432_v57, %v434_v23  ;;  %v509_v28 = vmul.f32 %v473_v36, %v437_v25  ;;  %603 = vmatpush1.bf16.msra.mxu1 %v527_v22 }
 0x1aa   :  { %v511_v27 = vmul.f32 %v475_v20, %v439_v4  ;;  %v510_v29 = vmul.f32 %v474_v17, %v436_v13  ;;  %562 = vmatpush1.bf16.msra.mxu0 %v525_v24  ;;  %v544_v33 = vsel %vm329_vm0, %v529_v26, 0 }
 0x1ab   :  { %v530_v31 = vpack.c.bf16 %v509_v28, %v509_v28 }
 0x1ac   :  { %v532_v30 = vpack.c.bf16 %v511_v27, %v511_v27  ;;  %v531_v32 = vpack.c.bf16 %v510_v29, %v510_v29 }
 0x1ad   :  { %977 = vmatprep.subr.msk.bf16.mxu0 %vm329_vm0, %v530_v31 }
 0x1ae   :  { %979 = vmatprep.subr.msk.bf16.mxu1 %vm329_vm0, %v532_v30  ;;  %v550_v18 = vsel %vm329_vm0, %v531_v32, 0  ;;  %564 = vmatpush1.bf16.msra.mxu0 %v544_v33  ;;  %v746_v33 = vld [vmem:[%s1818_s4 + $0x48] sm:$0xff] }
 0x1af   :  { %605 = vmatpush1.bf16.msra.mxu1 %v550_v18 }
 0x1b1   :  { %978 = vmatmul.mubr.msk.bf16.vlgmr.msra.gmra.mrb[4].mxu0 %vm539_vm9, %v512_v21 }
 0x1b2   :  { %980 = vmatmul.mubr.msk.bf16.vlgmr.msra.gmra.mrb[4].mxu1 %vm539_vm9, %v512_v21  ;;  %883 = vmatprep.mubr.bf16.mxu0 %v1045_v1  ;;  %v750_v21 = vld [vmem:[%s1818_s4 + $0x68] sm:$0xff] }
 0x1b3   :  { %924 = vmatprep.mubr.bf16.mxu1 %v1045_v1 }
 0x1b8   :  { %v537_v34 = vpop.permute.xlu0 %536 }
 0x284   :  { %v589_v16 = vpop.f32.mrb[4].mxu0 }
 0x285   :  { %v630_v40 = vpop.f32.mrb[4].mxu1  ;;  %v590_v41 = vadd.f32 %v589_v16, %v537_v34  ;;  %v591_v42 = vpop.f32.mrb[5].mxu0 }
 0x286   :  { %v631_v19 = vadd.f32 %v630_v40, %v537_v34  ;;  %v632_v43 = vpop.f32.mrb[5].mxu1  ;;  %v593_v44 = vpop.f32.mrb[6].mxu0  ;;  %v592_v49 = vadd.f32 %v591_v42, %v537_v34  ;;  %v751_v42 = vld [vmem:[%s1818_s4 + $0x70] sm:$0xff] }
 0x287   :  { %v634_v45 = vpop.f32.mrb[6].mxu1  ;;  %v1541_v48 = vmax.f32 %v590_v41, 0.0  ;;  %v594_v50 = vpop.f32.mrb[7].mxu0  ;;  %v633_v52 = vadd.f32 %v632_v43, %v537_v34  ;;  %v745_v41 = vld [vmem:[%s1818_s4 + $0x40] sm:$0xff] }
 0x288   :  { %v1539_v46 = vmax.f32 %v631_v19, 0.0  ;;  %v635_v51 = vpop.f32.mrb[7].mxu1  ;;  %v1547_v1 = vmax.f32 %v592_v49, 0.0  ;;  %v748_v45 = vld [vmem:[%s1818_s4 + $0x58] sm:$0xff] }
 0x289   :  { %641 = vrot.lane.b32.xlu1 %v1541_v48, %s1046_s14  ;;  %v1553_v53 = vmax.f32 %v633_v52, 0.0  ;;  %v749_v51 = vld [vmem:[%s1818_s4 + $0x60] sm:$0xff]  ;;  %v752_v52 = vld [vmem:[%s1818_s4 + $0x78] sm:$0xff] }
 0x28a   :  { %645 = vrot.lane.b32.xlu0 %v1539_v46, %s1046_s14 }
 0x28d   :  { %643 = vrot.lane.b32.xlu1 %v1547_v1, %s1046_s14 }
 0x28e   :  { %653 = vrot.lane.b32.xlu0 %v1541_v48, %s1047_s1 }
 0x291   :  { %647 = vrot.lane.b32.xlu1 %v1553_v53, %s1046_s14 }
 0x292   :  { %657 = vrot.lane.b32.xlu0 %v1539_v46, %s1047_s1 }
 0x295   :  { %655 = vrot.lane.b32.xlu1 %v1547_v1, %s1047_s1 }
 0x296   :  { %665 = vrot.lane.b32.xlu0 %v1541_v48, %s1048_s15 }
 0x299   :  { %659 = vrot.lane.b32.xlu1 %v1553_v53, %s1047_s1 }
 0x29a   :  { %669 = vrot.lane.b32.xlu0 %v1539_v46, %s1048_s15 }
 0x29d   :  { %667 = vrot.lane.b32.xlu1 %v1547_v1, %s1048_s15 }
 0x29e   :  { %677 = vrot.lane.b32.xlu0 %v1541_v48, %s1049_s16 }
 0x2a1   :  { %671 = vrot.lane.b32.xlu1 %v1553_v53, %s1048_s15 }
 0x2a2   :  { %681 = vrot.lane.b32.xlu0 %v1539_v46, %s1049_s16 }
 0x2a5   :  { %679 = vrot.lane.b32.xlu1 %v1547_v1, %s1049_s16 }
 0x2a6   :  { %689 = vrot.lane.b32.xlu0 %v1541_v48, %s1050_s17 }
 0x2a9   :  { %683 = vrot.lane.b32.xlu1 %v1553_v53, %s1049_s16 }
 0x2aa   :  { %693 = vrot.lane.b32.xlu0 %v1539_v46, %s1050_s17 }
 0x2ad   :  { %691 = vrot.lane.b32.xlu1 %v1547_v1, %s1050_s17 }
 0x2ae   :  { %701 = vrot.lane.b32.xlu0 %v1541_v48, %s1051_s18 }
 0x2b1   :  { %695 = vrot.lane.b32.xlu1 %v1553_v53, %s1050_s17 }
 0x2b2   :  { %705 = vrot.lane.b32.xlu0 %v1539_v46, %s1051_s18 }
 0x2b5   :  { %703 = vrot.lane.b32.xlu1 %v1547_v1, %s1051_s18 }
 0x2b6   :  { %713 = vrot.lane.b32.xlu0 %v1541_v48, %s1052_s19 }
 0x2b9   :  { %707 = vrot.lane.b32.xlu1 %v1553_v53, %s1051_s18 }
 0x2ba   :  { %717 = vrot.lane.b32.xlu0 %v1539_v46, %s1052_s19 }
 0x2bd   :  { %715 = vrot.lane.b32.xlu1 %v1547_v1, %s1052_s19 }
 0x2be   :  { %725 = vrot.lane.b32.xlu0 %v1541_v48, %s1053_s20 }
 0x2c1   :  { %719 = vrot.lane.b32.xlu1 %v1553_v53, %s1052_s19 }
 0x2c2   :  { %729 = vrot.lane.b32.xlu0 %v1539_v46, %s1053_s20 }
 0x2c5   :  { %727 = vrot.lane.b32.xlu1 %v1547_v1, %s1053_s20 }
 0x2c6   :  { %833 = vperm.xlu0 %994, %v830_v38   ;;  %v747_v38 = vld [vmem:[%s1818_s4 + $0x50] sm:$0xff] }
 0x2c9   :  { %731 = vrot.lane.b32.xlu1 %v1553_v53, %s1053_s20 }
 0x2fb   :  { %v642_v54 = vpop.permute.xlu1 %641 }
 0x2fc   :  { %v646_v39 = vpop.permute.xlu0 %645 }
 0x2ff   :  { %v644_v58 = vpop.permute.xlu1 %643 }
 0x300   :  { %v654_v55 = vpop.permute.xlu0 %653  ;;  %v651_v63 = vsel %vm344_vm1, %v642_v54, %v644_v58  ;;  %v650_v15 = vsel %vm344_vm1, %v644_v58, %v646_v39 }
 0x301   :  { %v774_v37 = vmul.f32 %v738_v62, %v651_v63  ;;  %v775_v25 = vmul.f32 %v739_v14, %v650_v15 }
 0x303   :  { %v648_v61 = vpop.permute.xlu1 %647 }
 0x304   :  { %v658_v60 = vpop.permute.xlu0 %657  ;;  %v649_v0 = vsel %vm344_vm1, %v646_v39, %v648_v61  ;;  %v652_v10 = vsel %vm344_vm1, %v648_v61, %v642_v54 }
 0x305   :  { %v773_v57 = vmul.f32 %v737_v6, %v652_v10  ;;  %v776_v24 = vmul.f32 %v740_v35, %v649_v0  ;;  %v757_v6 = vld [vmem:[%s1818_s4 + $0xa0] sm:$0xff] }
 0x307   :  { %v656_v5 = vpop.permute.xlu1 %655 }
 0x308   :  { %v666_v3 = vpop.permute.xlu0 %665  ;;  %v663_v47 = vsel %vm357_vm2, %v654_v55, %v656_v5  ;;  %v662_v8 = vsel %vm357_vm2, %v656_v5, %v658_v60 }
 0x309   :  { %v778_v9 = vmul.f32 %v742_v2, %v663_v47  ;;  %v779_v17 = vmul.f32 %v743_v7, %v662_v8  ;;  %v753_v47 = vld [vmem:[%s1818_s4 + $0x80] sm:$0xff]  ;;  %v758_v7 = vld [vmem:[%s1818_s4 + $0xa8] sm:$0xff] }
 0x30a   :  { %v754_v8 = vld [vmem:[%s1818_s4 + $0x88] sm:$0xff]  ;;  %v789_v15 = vmul.f32 %v753_v47, %v1541_v48  ;;  %v756_v48 = vld [vmem:[%s1818_s4 + $0x98] sm:$0xff] }
 0x30b   :  { %v660_v20 = vpop.permute.xlu1 %659  ;;  %v811_v36 = vpack.c.bf16 %v778_v9, %v774_v37  ;;  %v812_v30 = vpack.c.bf16 %v779_v17, %v775_v25  ;;  %v790_v17 = vmul.f32 %v754_v8, %v1547_v1 }
 0x30c   :  { %v670_v56 = vpop.permute.xlu0 %669  ;;  %v661_v22 = vsel %vm357_vm2, %v658_v60, %v660_v20  ;;  %v664_v23 = vsel %vm357_vm2, %v660_v20, %v654_v55 }
 0x30d   :  { %v777_v4 = vmul.f32 %v741_v11, %v664_v23  ;;  %v780_v13 = vmul.f32 %v744_v12, %v661_v22  ;;  %851 = vmatprep.subr.bf16.mxu0 %v811_v36  ;;  %v755_v36 = vld [vmem:[%s1818_s4 + $0x90] sm:$0xff]  ;;  %v760_v23 = vld [vmem:[%s1818_s4 + $0xb8] sm:$0xff] }
 0x30e   :  { %v759_v22 = vld [vmem:[%s1818_s4 + $0xb0] sm:$0xff] }
 0x30f   :  { %v810_v26 = vpack.c.bf16 %v777_v4, %v773_v57  ;;  %v668_v28 = vpop.permute.xlu1 %667  ;;  %v813_v29 = vpack.c.bf16 %v780_v13, %v776_v24 }
 0x310   :  { %v678_v27 = vpop.permute.xlu0 %677  ;;  %v675_v18 = vsel %vm370_vm3, %v666_v3, %v668_v28  ;;  %v674_v39 = vsel %vm370_vm3, %v668_v28, %v670_v56 }
 0x311   :  { %852 = vmatpush1.bf16.msra.mxu0 %v810_v26  ;;  %892 = vmatprep.subr.bf16.mxu1 %v813_v29  ;;  %v782_v19 = vmul.f32 %v746_v33, %v675_v18  ;;  %v783_v37 = vmul.f32 %v747_v38, %v674_v39  ;;  %v791_v26 = vmul.f32 %v755_v36, %v1539_v46  ;;  %v762_v46 = vld [vmem:[%s1818_s4 + $0xc8] sm:$0xff]  ;;  %v764_v38 = vld [vmem:[%s1818_s4 + $0xd8] sm:$0xff] }
 0x312   :  { %893 = vmatpush1.bf16.msra.mxu1 %v812_v30  ;;  %v792_v29 = vmul.f32 %v756_v48, %v1553_v53 }
 0x313   :  { %v672_v32 = vpop.permute.xlu1 %671 }
 0x314   :  { %v682_v31 = vpop.permute.xlu0 %681  ;;  %v673_v49 = vsel %vm370_vm3, %v670_v56, %v672_v32  ;;  %v676_v50 = vsel %vm370_vm3, %v672_v32, %v666_v3 }
 0x315   :  { %v781_v63 = vmul.f32 %v745_v41, %v676_v50  ;;  %v784_v2 = vmul.f32 %v748_v45, %v673_v49  ;;  %v763_v49 = vld [vmem:[%s1818_s4 + $0xd0] sm:$0xff] }
 0x317   :  { %v680_v40 = vpop.permute.xlu1 %679 }
 0x318   :  { %v690_v34 = vpop.permute.xlu0 %689  ;;  %v687_v16 = vsel %vm383_vm4, %v678_v27, %v680_v40  ;;  %v686_v43 = vsel %vm383_vm4, %v680_v40, %v682_v31 }
 0x319   :  { %v786_v44 = vmul.f32 %v750_v21, %v687_v16  ;;  %v787_v60 = vmul.f32 %v751_v42, %v686_v43  ;;  %v765_v16 = vld [vmem:[%s1818_s4 + $0xe0] sm:$0xff] }
 0x31b   :  { %v684_v55 = vpop.permute.xlu1 %683  ;;  %v815_v58 = vpack.c.bf16 %v786_v44, %v782_v19  ;;  %v816_v11 = vpack.c.bf16 %v787_v60, %v783_v37  ;;  %v766_v19 = vld [vmem:[%s1818_s4 + $0xe8] sm:$0xff] }
 0x31c   :  { %v694_v54 = vpop.permute.xlu0 %693  ;;  %v685_v61 = vsel %vm383_vm4, %v682_v31, %v684_v55  ;;  %v688_v62 = vsel %vm383_vm4, %v684_v55, %v678_v27  ;;  %v767_v55 = vld [vmem:[%s1818_s4 + $0xf0] sm:$0xff] }
 0x31d   :  { %v785_v3 = vmul.f32 %v749_v51, %v688_v62  ;;  %v788_v5 = vmul.f32 %v752_v52, %v685_v61  ;;  %853 = vmatprep.subr.bf16.mxu0 %v815_v58  ;;  %v768_v58 = vld [vmem:[%s1818_s4 + $0xf8] sm:$0xff] }
 0x31f   :  { %v814_v9 = vpack.c.bf16 %v785_v3, %v781_v63  ;;  %v692_v0 = vpop.permute.xlu1 %691  ;;  %v817_v10 = vpack.c.bf16 %v788_v5, %v784_v2 }
 0x320   :  { %v702_v35 = vpop.permute.xlu0 %701  ;;  %v698_v12 = vsel %vm396_vm5, %v692_v0, %v694_v54  ;;  %v699_v14 = vsel %vm396_vm5, %v690_v34, %v692_v0 }
 0x321   :  { %v793_v56 = vmul.f32 %v757_v6, %v699_v14  ;;  %v794_v20 = vmul.f32 %v758_v7, %v698_v12  ;;  %854 = vmatpush1.bf16.msra.mxu0 %v814_v9  ;;  %894 = vmatprep.subr.bf16.mxu1 %v817_v10  ;;  %v769_v6 = vld [vmem:[%s1818_s4 + $0x100] sm:$0xff]  ;;  %v770_v7 = vld [vmem:[%s1818_s4 + $0x108] sm:$0xff] }
 0x322   :  { %895 = vmatpush1.bf16.msra.mxu1 %v816_v11 }
 0x323   :  { %v818_v57 = vpack.c.bf16 %v793_v56, %v789_v15  ;;  %v696_v4 = vpop.permute.xlu1 %695  ;;  %v819_v13 = vpack.c.bf16 %v794_v20, %v790_v17  ;;  %v771_v15 = vld [vmem:[%s1818_s4 + $0x110] sm:$0xff]  ;;  %v772_v56 = vld [vmem:[%s1818_s4 + $0x118] sm:$0xff] }
 0x324   :  { %v706_v24 = vpop.permute.xlu0 %705  ;;  %v697_v1 = vsel %vm396_vm5, %v694_v54, %v696_v4  ;;  %v700_v25 = vsel %vm396_vm5, %v696_v4, %v690_v34  ;;  %v761_v34 = vld [vmem:[%s1818_s4 + $0xc0] sm:$0xff] }
 0x325   :  { %v795_v27 = vmul.f32 %v759_v22, %v697_v1  ;;  %v796_v28 = vmul.f32 %v760_v23, %v700_v25  ;;  %855 = vmatprep.subr.bf16.mxu0 %v819_v13  ;;  %v809_v4 = vld [vmem:[%s1819_s7] sm:$0xf] }
 0x326   :  { %856 = vmatpush1.bf16.msra.mxu0 %v818_v57 }
 0x327   :  { %v820_v30 = vpack.c.bf16 %v795_v27, %v791_v26  ;;  %v704_v32 = vpop.permute.xlu1 %703  ;;  %v821_v33 = vpack.c.bf16 %v796_v28, %v792_v29 }
 0x328   :  { %v714_v31 = vpop.permute.xlu0 %713  ;;  %v710_v53 = vsel %vm409_vm6, %v704_v32, %v706_v24  ;;  %v711_v40 = vsel %vm409_vm6, %v702_v35, %v704_v32 }
 0x329   :  { %896 = vmatprep.subr.bf16.mxu1 %v821_v33  ;;  %v797_v44 = vmul.f32 %v761_v34, %v711_v40  ;;  %v798_v45 = vmul.f32 %v762_v46, %v710_v53 }
 0x32a   :  { %897 = vmatpush1.bf16.msra.mxu1 %v820_v30 }
 0x32b   :  { %v708_v21 = vpop.permute.xlu1 %707 }
 0x32c   :  { %v718_v18 = vpop.permute.xlu0 %717  ;;  %v709_v39 = vsel %vm409_vm6, %v706_v24, %v708_v21  ;;  %v712_v54 = vsel %vm409_vm6, %v708_v21, %v702_v35 }
 0x32d   :  { %v799_v3 = vmul.f32 %v763_v49, %v709_v39  ;;  %v800_v5 = vmul.f32 %v764_v38, %v712_v54 }
 0x32f   :  { %v716_v41 = vpop.permute.xlu1 %715 }
 0x330   :  { %v722_v42 = vsel %vm422_vm7, %v716_v41, %v718_v18  ;;  %v723_v43 = vsel %vm422_vm7, %v714_v31, %v716_v41  ;;  %v726_v50 = vpop.permute.xlu0 %725 }
 0x331   :  { %v801_v51 = vmul.f32 %v765_v16, %v723_v43  ;;  %v802_v52 = vmul.f32 %v766_v19, %v722_v42 }
 0x333   :  { %v822_v60 = vpack.c.bf16 %v801_v51, %v797_v44  ;;  %v720_v61 = vpop.permute.xlu1 %719  ;;  %v823_v62 = vpack.c.bf16 %v802_v52, %v798_v45 }
 0x334   :  { %v721_v63 = vsel %vm422_vm7, %v718_v18, %v720_v61  ;;  %v724_v2 = vsel %vm422_vm7, %v720_v61, %v714_v31  ;;  %v730_v8 = vpop.permute.xlu0 %729 }
 0x335   :  { %v803_v47 = vmul.f32 %v767_v55, %v721_v63  ;;  %v804_v37 = vmul.f32 %v768_v58, %v724_v2  ;;  %857 = vmatprep.subr.bf16.mxu0 %v823_v62 }
 0x336   :  { %858 = vmatpush1.bf16.msra.mxu0 %v822_v60 }
 0x337   :  { %v824_v9 = vpack.c.bf16 %v803_v47, %v799_v3  ;;  %v728_v35 = vpop.permute.xlu1 %727  ;;  %v825_v0 = vpack.c.bf16 %v804_v37, %v800_v5 }
 0x338   :  { %v734_v10 = vsel %vm435_vm8, %v728_v35, %v730_v8  ;;  %v735_v11 = vsel %vm435_vm8, %v726_v50, %v728_v35 }
 0x339   :  { %v805_v12 = vmul.f32 %v769_v6, %v735_v11  ;;  %v806_v14 = vmul.f32 %v770_v7, %v734_v10  ;;  %898 = vmatprep.subr.bf16.mxu1 %v825_v0 }
 0x33a   :  { %899 = vmatpush1.bf16.msra.mxu1 %v824_v9 }
 0x33b   :  { %v826_v20 = vpack.c.bf16 %v805_v12, %v805_v12  ;;  %v827_v36 = vpack.c.bf16 %v806_v14, %v806_v14  ;;  %v732_v17 = vpop.permute.xlu1 %731 }
 0x33c   :  { %v733_v22 = vsel %vm435_vm8, %v730_v8, %v732_v17  ;;  %v736_v23 = vsel %vm435_vm8, %v732_v17, %v726_v50 }
 0x33d   :  { %v807_v48 = vmul.f32 %v771_v15, %v733_v22  ;;  %v808_v57 = vmul.f32 %v772_v56, %v736_v23  ;;  %981 = vmatprep.subr.msk.bf16.mxu0 %vm329_vm0, %v827_v36  ;;  %v840_v24 = vsel %vm329_vm0, %v826_v20, 0 }
 0x33e   :  { %860 = vmatpush1.bf16.msra.mxu0 %v840_v24 }
 0x33f   :  { %v828_v13 = vpack.c.bf16 %v807_v48, %v807_v48  ;;  %v829_v1 = vpack.c.bf16 %v808_v57, %v808_v57 }
 0x341   :  { %982 = vmatmul.mubr.msk.bf16.vlgmr.msra.gmra.mrb[8].mxu0 %vm539_vm9, %v809_v4  ;;  %983 = vmatprep.subr.msk.bf16.mxu1 %vm329_vm0, %v829_v1  ;;  %v846_v59 = vsel %vm329_vm0, %v828_v13, 0 }
 0x342   :  { %901 = vmatpush1.bf16.msra.mxu1 %v846_v59 }
 0x345   :  { %984 = vmatmul.mubr.msk.bf16.vlgmr.msra.gmra.mrb[8].mxu1 %vm539_vm9, %v809_v4  ;;  %v834_v25 = vpop.permute.xlu0 %833 }
 0x414   :  { %v885_v26 = vpop.f32.mrb[8].mxu0 }
 0x415   :  { %v886_v27 = vadd.f32 %v885_v26, %v834_v25  ;;  %v887_v28 = vpop.f32.mrb[9].mxu0 }
 0x416   :  { %v888_v29 = vadd.f32 %v887_v28, %v834_v25  ;;  %v889_v30 = vpop.f32.mrb[10].mxu0 }
 0x417   :  { %v933_v31 = vmax.f32 %v886_v27, 0.0  ;;  %v890_v32 = vpop.f32.mrb[11].mxu0 }
 0x418   :  { %v934_v33 = vmax.f32 %v888_v29, 0.0  ;;  %v926_v18 = vpop.f32.mrb[8].mxu1 }
 0x419   :  { %937 = vst [vmem:[%s1820_s9] sm:$0xff] %v933_v31  ;;  %v927_v21 = vadd.f32 %v926_v18, %v834_v25  ;;  %v928_v34 = vpop.f32.mrb[9].mxu1 }
 0x41a   :  { %938 = vst [vmem:[%s1820_s9 + $0x8] sm:$0xff] %v934_v33  ;;  %v929_v46 = vadd.f32 %v928_v34, %v834_v25  ;;  %v930_v53 = vpop.f32.mrb[10].mxu1 }
 0x41b   :  { %v935_v40 = vmax.f32 %v927_v21, 0.0  ;;  %v931_v16 = vpop.f32.mrb[11].mxu1 }
 0x41c   :  { %v936_v19 = vmax.f32 %v929_v46, 0.0 }
 0x41d   :  { %939 = vst [vmem:[%s1820_s9 + $0x10] sm:$0xff] %v935_v40 }
 0x41e   :  { %940 = vst [vmem:[%s1820_s9 + $0x18] sm:$0xff] %v936_v19 }

</bundles_post_ra>
